<compile_context>
chip_gen: v5e
topology: v5e:2x2
jax: 0.10.0
libtpu: 0.0.40
codegen_flags: <defaults>
</compile_context>

<pallas_src>
import jax
import jax.numpy as jnp
from jax import lax
from jax.experimental import pallas as pl
from jax.experimental.pallas import tpu as pltpu


# ----------------------------- Pallas kernel --------------------------------
def aagcn_kernel(tf_ref, e_ref, a_ref, gcw_ref, gcb_ref, fcw_ref, fcb_ref,
                 out_ref):
    BB, S, D = tf_ref.shape
    tf = tf_ref[...]                                   # (BB, S, D) f32

    # Adjacency prep (vectorised over the batch block, computed once and reused
    # by the two GCN layers that share each adjacency).  The divide is an exact
    # f32 divide; the raw 0/1 adjacency stays bit-exact in bf16 for the MXU.
    def prep(adj_ref):
        adj = adj_ref[...]                             # (BB, S, S) bf16 (0/1)
        rowsum = jnp.sum(adj.astype(jnp.float32), axis=2, keepdims=True)
        inv = 1.0 / (rowsum + 1.0)                     # (BB, S, 1) exact f32
        return adj, inv

    e_adj, e_inv = prep(e_ref)
    a_adj, a_inv = prep(a_ref)

    # gc1(e), gc2(a), gc3(e), gc4(a), each followed by ReLU.
    x = tf
    for layer, (adj, inv) in enumerate(((e_adj, e_inv), (a_adj, a_inv),
                                        (e_adj, e_inv), (a_adj, a_inv))):
        w = gcw_ref[layer]                             # (D, D) bf16
        # Weight matmul on folded batch: one dense (BB*S, D) @ (D, D) MXU op.
        hidden = jnp.dot(x.reshape(BB * S, D).astype(jnp.bfloat16), w,
                         preferred_element_type=jnp.float32)
        hidden = hidden.reshape(BB, S, D).astype(jnp.bfloat16)
        # Batched adjacency matmul: batch dim 0, contract adj axis2 / hid axis1.
        y = lax.dot_general(adj, hidden,
                            dimension_numbers=(((2,), (1,)), ((0,), (0,))),
                            preferred_element_type=jnp.float32)   # (BB, S, D)
        b = gcb_ref[layer].reshape(1, 1, D)            # (1, 1, D) f32
        x = jnp.maximum(y * inv + b, 0.0)              # (BB, S, D) f32

    # Attention pooling with the colsum-before-matmul rewrite:
    #   sum_i (x_b @ t_b^T)[i, :] == (sum_i x_b[i, :]) @ t_b^T
    xsum = jnp.sum(x, axis=1)                          # (BB, D)
    scores = jnp.sum(xsum[:, None, :] * tf, axis=2)    # (BB, S)
    scores = scores - jnp.max(scores, axis=1, keepdims=True)
    p = jnp.exp(scores)
    alpha = p * pl.reciprocal(jnp.sum(p, axis=1, keepdims=True),
                              approx=True)             # softmax (EUP recip ok)
    pooled = jnp.sum(alpha[:, :, None] * tf, axis=1)   # (BB, D)

    # Classifier: one dense matmul + one sublane/lane-dense store.
    logits = jnp.dot(pooled.astype(jnp.bfloat16), fcw_ref[...],
                     preferred_element_type=jnp.float32) + fcb_ref[...]
    out_ref[...] = logits                              # (BB, PPAD) f32


# ------------------------- parameter preparation -----------------------------
def prepare_params(params, D, P):
    """One-time packing: stack GCN weights, pad classifier to 128 lanes."""
    PPAD = ((P + 127) // 128) * 128
    gcw = jnp.stack([params[f"gc{i}_w"] for i in (1, 2, 3, 4)],
                    axis=0).astype(jnp.bfloat16)                     # (4, D, D)
    gcb = jnp.stack([params[f"gc{i}_b"].reshape(1, D) for i in (1, 2, 3, 4)],
                    axis=0).astype(jnp.float32)                      # (4, 1, D)
    fcw = jnp.zeros((D, PPAD), jnp.bfloat16).at[:, :P].set(
        params["fc_w"].astype(jnp.bfloat16))                         # (D, PPAD)
    fcb = jnp.zeros((1, PPAD), jnp.float32).at[:, :P].set(
        params["fc_b"][None, :].astype(jnp.float32))                 # (1, PPAD)
    return {"gcw": gcw, "gcb": gcb, "fcw": fcw, "fcb": fcb,
            "P": P, "PPAD": PPAD}


# ------------------------------- wrapper -------------------------------------
def aagcn_forward(text_out, e_adj, a_adj, prep):
    """text_out: (B,S,D) f32, e_adj/a_adj: (B,S,S), prep: prepare_params(...)."""
    B, S, D = text_out.shape
    P, PPAD = prep["P"], prep["PPAD"]

    # Batch tile: <=8 rows per step (sublane-aligned output blocks when B > 8).
    BB = B if B <= 8 else 8
    B_pad = ((B + BB - 1) // BB) * BB
    if B_pad != B:
        pad = [(0, B_pad - B), (0, 0), (0, 0)]
        text_out = jnp.pad(text_out, pad)
        e_adj = jnp.pad(e_adj, pad)
        a_adj = jnp.pad(a_adj, pad)

    # Adjacencies are 0/1 -> bf16 is exact and halves the HBM->VMEM traffic.
    e_bf = e_adj.astype(jnp.bfloat16)
    a_bf = a_adj.astype(jnp.bfloat16)
    tf = text_out.astype(jnp.float32)

    # VMEM budget: per-step working set (+double-buffering, +temporaries),
    # capped at ~75% of the physical VMEM of whatever chip we're on.
    try:
        vmem_cap = int(getattr(pltpu.get_tpu_info(), "vmem_capacity_bytes",
                               64 << 20))
    except Exception:  # pragma: no cover - conservative fallback
        vmem_cap = 64 << 20
    block_bytes = (BB * S * D * 4 + 2 * BB * S * S * 2       # tf + adjacencies
                   + 4 * D * D * 2 + 4 * D * 4               # GCN weights/bias
                   + D * PPAD * 2 + PPAD * 4                 # classifier
                   + BB * PPAD * 4)                          # output block
    temp_bytes = 6 * BB * S * D * 4 + 2 * BB * S * S * 4     # in-kernel temps
    vmem_limit = max(32 << 20,
                     min(2 * block_bytes + temp_bytes, int(0.75 * vmem_cap)))

    grid = (B_pad // BB,)
    flops = (4 * (2 * B_pad * S * D * D + 2 * B_pad * S * S * D)  # GCN layers
             + 2 * B_pad * S * D                                  # scores
             + 2 * B_pad * S * D                                  # pooled
             + 2 * B_pad * D * PPAD)                              # classifier
    transcendentals = B_pad * S + 2 * B_pad
    in_arrays = (tf, e_bf, a_bf, prep["gcw"], prep["gcb"], prep["fcw"],
                 prep["fcb"])
    bytes_accessed = int(sum(a.size * a.dtype.itemsize for a in in_arrays)
                         + B_pad * PPAD * 4)

    out = pl.pallas_call(
        aagcn_kernel,
        out_shape=jax.ShapeDtypeStruct((B_pad, PPAD), jnp.float32),
        grid_spec=pltpu.PrefetchScalarGridSpec(
            num_scalar_prefetch=0,
            grid=grid,
            in_specs=[
                pl.BlockSpec((BB, S, D), lambda i: (i, 0, 0)),    # text_out
                pl.BlockSpec((BB, S, S), lambda i: (i, 0, 0)),    # e_adj
                pl.BlockSpec((BB, S, S), lambda i: (i, 0, 0)),    # a_adj
                pl.BlockSpec((4, D, D), lambda i: (0, 0, 0)),     # gc weights
                pl.BlockSpec((4, 1, D), lambda i: (0, 0, 0)),     # gc biases
                pl.BlockSpec((D, PPAD), lambda i: (0, 0)),        # fc weight
                pl.BlockSpec((1, PPAD), lambda i: (0, 0)),        # fc bias
            ],
            out_specs=pl.BlockSpec((BB, PPAD), lambda i: (i, 0)),
        ),
        cost_estimate=pl.CostEstimate(flops=int(flops),
                                      transcendentals=int(transcendentals),
                                      bytes_accessed=bytes_accessed),
        compiler_params=pltpu.CompilerParams(
            dimension_semantics=("parallel",),
            vmem_limit_bytes=int(vmem_limit)),
    )(*in_arrays)
    return out[:B, :P]                                            # (B, P)


# --------------------------- pure-JAX reference ------------------------------
def aagcn_reference(text_out, e_adj, a_adj, params):
    def gcn(x, adj, w, b):
        hidden = x @ w
        denom = jnp.sum(adj, axis=2, keepdims=True) + 1.0
        return jnp.einsum("bij,bjd->bid", adj, hidden) / denom + b

    x = jax.nn.relu(gcn(text_out, e_adj, params["gc1_w"], params["gc1_b"]))
    x = jax.nn.relu(gcn(x, a_adj, params["gc2_w"], params["gc2_b"]))
    x = jax.nn.relu(gcn(x, e_adj, params["gc3_w"], params["gc3_b"]))
    x = jax.nn.relu(gcn(x, a_adj, params["gc4_w"], params["gc4_b"]))
    alpha_mat = jnp.einsum("bid,bjd->bij", x, text_out)
    alpha = jax.nn.softmax(jnp.sum(alpha_mat, axis=1, keepdims=True), axis=2)
    pooled = jnp.einsum("bij,bjd->bid", alpha, text_out)[:, 0, :]
    return pooled @ params["fc_w"] + params["fc_b"]


# ---------------------------------- main --------------------------------------
if __name__ == "__main__":
    # Small, forward-consistent shapes.
    B, S, D, P = 2, 16, 32, 3        # batch, seq len, bert_dim, polarities_dim
    VOCAB, SEGS = 30, 2

    key = jax.random.PRNGKey(0)
    keys = jax.random.split(key, 16)

    # --- synthetic inputs (text_bert_indices, bert_segments_ids, e_adj, a_adj)
    text_bert_indices = jax.random.randint(keys[0], (B, S), 0, VOCAB)
    bert_segments_ids = jax.random.randint(keys[1], (B, S), 0, SEGS)
    e_adj = (jax.random.uniform(keys[2], (B, S, S)) > 0.5).astype(jnp.float32)
    a_adj = (jax.random.uniform(keys[3], (B, S, S)) > 0.5).astype(jnp.float32)

    # --- stub BERT: word + segment embedding lookup (deterministic) ----------
    word_emb = jax.random.normal(keys[4], (VOCAB, D), jnp.float32) * 0.1
    seg_emb = jax.random.normal(keys[5], (SEGS, D), jnp.float32) * 0.1
    text_out = word_emb[text_bert_indices] + seg_emb[bert_segments_ids]  # (B,S,D)

    # --- deterministic parameter init (shapes from module __init__) ----------
    params = {}
    for i in (1, 2, 3, 4):
        params[f"gc{i}_w"] = jax.random.normal(keys[5 + i], (D, D),
                                               jnp.float32) * 0.1
        params[f"gc{i}_b"] = jnp.full((D,), 0.01 * i, jnp.float32)
    params["fc_w"] = jax.random.normal(keys[10], (D, P), jnp.float32) * 0.1
    params["fc_b"] = jnp.zeros((P,), jnp.float32)

    prep = prepare_params(params, D, P)          # one-time packing / padding

    out = aagcn_forward(text_out, e_adj, a_adj, prep)
    out = jax.block_until_ready(out)

    ref = aagcn_reference(text_out, e_adj, a_adj, params)
    assert out.shape == (B, P)
    # Tolerance accounts for bf16 MXU operands (f32 accumulation) through the
    # four GCN layers / classifier and the approximate softmax reciprocal.
    assert jnp.allclose(out, ref, atol=2e-2, rtol=2e-2), (out, ref)

    print("KERNEL_OK")
</pallas_src>

<mosaic_0001>
module attributes {stable_mosaic.version = 11 : i64} {
  func.func @aagcn_kernel(%arg0: i32, %arg1: memref<2x16x32xf32, #tpu.memory_space<vmem>>, %arg2: memref<2x16x16xbf16, #tpu.memory_space<vmem>>, %arg3: memref<2x16x16xbf16, #tpu.memory_space<vmem>>, %arg4: memref<4x32x32xbf16, #tpu.memory_space<vmem>>, %arg5: memref<4x1x32xf32, #tpu.memory_space<vmem>>, %arg6: memref<32x128xbf16, #tpu.memory_space<vmem>>, %arg7: memref<1x128xf32, #tpu.memory_space<vmem>>, %arg8: memref<2x128xf32, #tpu.memory_space<vmem>>) attributes {dimension_semantics = [#tpu.dimension_semantics<parallel>], iteration_bounds = array<i64: 1>, scalar_prefetch = 0 : i64, scratch_operands = 0 : i64, tpu.core_type = #tpu.core_type<tc>, window_params = [{transform_indices = @transform_0, window_bounds = array<i64: 2, 16, 32>}, {transform_indices = @transform_1, window_bounds = array<i64: 2, 16, 16>}, {transform_indices = @transform_2, window_bounds = array<i64: 2, 16, 16>}, {pipeline_mode = #tpu.pipeline_mode<synchronous>, transform_indices = @transform_3, window_bounds = array<i64: 4, 32, 32>}, {pipeline_mode = #tpu.pipeline_mode<synchronous>, transform_indices = @transform_4, window_bounds = array<i64: 4, 1, 32>}, {pipeline_mode = #tpu.pipeline_mode<synchronous>, transform_indices = @transform_5, window_bounds = array<i64: 32, 128>}, {pipeline_mode = #tpu.pipeline_mode<synchronous>, transform_indices = @transform_6, window_bounds = array<i64: 1, 128>}, {transform_indices = @transform_7, window_bounds = array<i64: 2, 128>}]} {
    %c0 = arith.constant 0 : index
    %c0_0 = arith.constant 0 : index
    %c0_1 = arith.constant 0 : index
    %0 = vector.load %arg1[%c0, %c0_0, %c0_1] : memref<2x16x32xf32, #tpu.memory_space<vmem>>, vector<2x16x32xf32>
    %c0_2 = arith.constant 0 : index
    %c0_3 = arith.constant 0 : index
    %c0_4 = arith.constant 0 : index
    %1 = vector.load %arg2[%c0_2, %c0_3, %c0_4] : memref<2x16x16xbf16, #tpu.memory_space<vmem>>, vector<2x16x16xbf16>
    %2 = arith.extf %1 : vector<2x16x16xbf16> to vector<2x16x16xf32>
    %cst = arith.constant dense<0.000000e+00> : vector<2x16xf32>
    %3 = vector.multi_reduction <add>, %2, %cst [2] : vector<2x16x16xf32> to vector<2x16xf32>
    %4 = vector.shape_cast %3 : vector<2x16xf32> to vector<2x16x1xf32>
    %cst_5 = arith.constant 1.000000e+00 : f32
    %5 = vector.broadcast %cst_5 : f32 to vector<2x16x1xf32>
    %6 = arith.addf %4, %5 : vector<2x16x1xf32>
    %cst_6 = arith.constant 1.000000e+00 : f32
    %7 = vector.broadcast %cst_6 : f32 to vector<2x16x1xf32>
    %8 = arith.divf %7, %6 : vector<2x16x1xf32>
    %c0_7 = arith.constant 0 : index
    %c0_8 = arith.constant 0 : index
    %c0_9 = arith.constant 0 : index
    %9 = vector.load %arg3[%c0_7, %c0_8, %c0_9] : memref<2x16x16xbf16, #tpu.memory_space<vmem>>, vector<2x16x16xbf16>
    %10 = arith.extf %9 : vector<2x16x16xbf16> to vector<2x16x16xf32>
    %cst_10 = arith.constant dense<0.000000e+00> : vector<2x16xf32>
    %11 = vector.multi_reduction <add>, %10, %cst_10 [2] : vector<2x16x16xf32> to vector<2x16xf32>
    %12 = vector.shape_cast %11 : vector<2x16xf32> to vector<2x16x1xf32>
    %cst_11 = arith.constant 1.000000e+00 : f32
    %13 = vector.broadcast %cst_11 : f32 to vector<2x16x1xf32>
    %14 = arith.addf %12, %13 : vector<2x16x1xf32>
    %cst_12 = arith.constant 1.000000e+00 : f32
    %15 = vector.broadcast %cst_12 : f32 to vector<2x16x1xf32>
    %16 = arith.divf %15, %14 : vector<2x16x1xf32>
    %c0_13 = arith.constant 0 : index
    %c0_14 = arith.constant 0 : index
    %c0_15 = arith.constant 0 : index
    %17 = vector.load %arg4[%c0_13, %c0_14, %c0_15] : memref<4x32x32xbf16, #tpu.memory_space<vmem>>, vector<1x32x32xbf16>
    %18 = vector.shape_cast %17 : vector<1x32x32xbf16> to vector<32x32xbf16>
    %19 = vector.shape_cast %0 : vector<2x16x32xf32> to vector<32x32xf32>
    %20 = arith.truncf %19 : vector<32x32xf32> to vector<32x32xbf16>
    %cst_16 = arith.constant dense<0.000000e+00> : vector<32x32xf32>
    %21 = tpu.matmul %20, %18, %cst_16 {dimension_numbers = #tpu.dot_dimension_numbers<[1], [0], [0], [1], [0, 0, 1, 1], [], []>} : vector<32x32xbf16>, vector<32x32xbf16>, vector<32x32xf32> -> vector<32x32xf32>
    %22 = vector.shape_cast %21 : vector<32x32xf32> to vector<2x16x32xf32>
    %23 = arith.truncf %22 : vector<2x16x32xf32> to vector<2x16x32xbf16>
    %cst_17 = arith.constant dense<0.000000e+00> : vector<2x16x32xf32>
    %24 = tpu.matmul %1, %23, %cst_17 {dimension_numbers = #tpu.dot_dimension_numbers<[2], [1], [1], [2], [0, 0, 0, 1, 1, 2], [0], [0]>} : vector<2x16x16xbf16>, vector<2x16x32xbf16>, vector<2x16x32xf32> -> vector<2x16x32xf32>
    %c0_18 = arith.constant 0 : index
    %c0_19 = arith.constant 0 : index
    %c0_20 = arith.constant 0 : index
    %25 = vector.load %arg5[%c0_18, %c0_19, %c0_20] : memref<4x1x32xf32, #tpu.memory_space<vmem>>, vector<1x1x32xf32>
    %26 = vector.shape_cast %25 : vector<1x1x32xf32> to vector<1x32xf32>
    %27 = vector.shape_cast %26 : vector<1x32xf32> to vector<1x1x32xf32>
    %28 = vector.broadcast %8 : vector<2x16x1xf32> to vector<2x16x32xf32>
    %29 = arith.mulf %24, %28 : vector<2x16x32xf32>
    %30 = vector.broadcast %27 : vector<1x1x32xf32> to vector<2x16x32xf32>
    %31 = arith.addf %29, %30 : vector<2x16x32xf32>
    %cst_21 = arith.constant 0.000000e+00 : f32
    %32 = vector.broadcast %cst_21 : f32 to vector<2x16x32xf32>
    %33 = arith.maximumf %31, %32 : vector<2x16x32xf32>
    %c1 = arith.constant 1 : index
    %c0_22 = arith.constant 0 : index
    %c0_23 = arith.constant 0 : index
    %34 = vector.load %arg4[%c1, %c0_22, %c0_23] : memref<4x32x32xbf16, #tpu.memory_space<vmem>>, vector<1x32x32xbf16>
    %35 = vector.shape_cast %34 : vector<1x32x32xbf16> to vector<32x32xbf16>
    %36 = vector.shape_cast %33 : vector<2x16x32xf32> to vector<32x32xf32>
    %37 = arith.truncf %36 : vector<32x32xf32> to vector<32x32xbf16>
    %cst_24 = arith.constant dense<0.000000e+00> : vector<32x32xf32>
    %38 = tpu.matmul %37, %35, %cst_24 {dimension_numbers = #tpu.dot_dimension_numbers<[1], [0], [0], [1], [0, 0, 1, 1], [], []>} : vector<32x32xbf16>, vector<32x32xbf16>, vector<32x32xf32> -> vector<32x32xf32>
    %39 = vector.shape_cast %38 : vector<32x32xf32> to vector<2x16x32xf32>
    %40 = arith.truncf %39 : vector<2x16x32xf32> to vector<2x16x32xbf16>
    %cst_25 = arith.constant dense<0.000000e+00> : vector<2x16x32xf32>
    %41 = tpu.matmul %9, %40, %cst_25 {dimension_numbers = #tpu.dot_dimension_numbers<[2], [1], [1], [2], [0, 0, 0, 1, 1, 2], [0], [0]>} : vector<2x16x16xbf16>, vector<2x16x32xbf16>, vector<2x16x32xf32> -> vector<2x16x32xf32>
    %c1_26 = arith.constant 1 : index
    %c0_27 = arith.constant 0 : index
    %c0_28 = arith.constant 0 : index
    %42 = vector.load %arg5[%c1_26, %c0_27, %c0_28] : memref<4x1x32xf32, #tpu.memory_space<vmem>>, vector<1x1x32xf32>
    %43 = vector.shape_cast %42 : vector<1x1x32xf32> to vector<1x32xf32>
    %44 = vector.shape_cast %43 : vector<1x32xf32> to vector<1x1x32xf32>
    %45 = vector.broadcast %16 : vector<2x16x1xf32> to vector<2x16x32xf32>
    %46 = arith.mulf %41, %45 : vector<2x16x32xf32>
    %47 = vector.broadcast %44 : vector<1x1x32xf32> to vector<2x16x32xf32>
    %48 = arith.addf %46, %47 : vector<2x16x32xf32>
    %cst_29 = arith.constant 0.000000e+00 : f32
    %49 = vector.broadcast %cst_29 : f32 to vector<2x16x32xf32>
    %50 = arith.maximumf %48, %49 : vector<2x16x32xf32>
    %c2 = arith.constant 2 : index
    %c0_30 = arith.constant 0 : index
    %c0_31 = arith.constant 0 : index
    %51 = vector.load %arg4[%c2, %c0_30, %c0_31] : memref<4x32x32xbf16, #tpu.memory_space<vmem>>, vector<1x32x32xbf16>
    %52 = vector.shape_cast %51 : vector<1x32x32xbf16> to vector<32x32xbf16>
    %53 = vector.shape_cast %50 : vector<2x16x32xf32> to vector<32x32xf32>
    %54 = arith.truncf %53 : vector<32x32xf32> to vector<32x32xbf16>
    %cst_32 = arith.constant dense<0.000000e+00> : vector<32x32xf32>
    %55 = tpu.matmul %54, %52, %cst_32 {dimension_numbers = #tpu.dot_dimension_numbers<[1], [0], [0], [1], [0, 0, 1, 1], [], []>} : vector<32x32xbf16>, vector<32x32xbf16>, vector<32x32xf32> -> vector<32x32xf32>
    %56 = vector.shape_cast %55 : vector<32x32xf32> to vector<2x16x32xf32>
    %57 = arith.truncf %56 : vector<2x16x32xf32> to vector<2x16x32xbf16>
    %cst_33 = arith.constant dense<0.000000e+00> : vector<2x16x32xf32>
    %58 = tpu.matmul %1, %57, %cst_33 {dimension_numbers = #tpu.dot_dimension_numbers<[2], [1], [1], [2], [0, 0, 0, 1, 1, 2], [0], [0]>} : vector<2x16x16xbf16>, vector<2x16x32xbf16>, vector<2x16x32xf32> -> vector<2x16x32xf32>
    %c2_34 = arith.constant 2 : index
    %c0_35 = arith.constant 0 : index
    %c0_36 = arith.constant 0 : index
    %59 = vector.load %arg5[%c2_34, %c0_35, %c0_36] : memref<4x1x32xf32, #tpu.memory_space<vmem>>, vector<1x1x32xf32>
    %60 = vector.shape_cast %59 : vector<1x1x32xf32> to vector<1x32xf32>
    %61 = vector.shape_cast %60 : vector<1x32xf32> to vector<1x1x32xf32>
    %62 = vector.broadcast %8 : vector<2x16x1xf32> to vector<2x16x32xf32>
    %63 = arith.mulf %58, %62 : vector<2x16x32xf32>
    %64 = vector.broadcast %61 : vector<1x1x32xf32> to vector<2x16x32xf32>
    %65 = arith.addf %63, %64 : vector<2x16x32xf32>
    %cst_37 = arith.constant 0.000000e+00 : f32
    %66 = vector.broadcast %cst_37 : f32 to vector<2x16x32xf32>
    %67 = arith.maximumf %65, %66 : vector<2x16x32xf32>
    %c3 = arith.constant 3 : index
    %c0_38 = arith.constant 0 : index
    %c0_39 = arith.constant 0 : index
    %68 = vector.load %arg4[%c3, %c0_38, %c0_39] : memref<4x32x32xbf16, #tpu.memory_space<vmem>>, vector<1x32x32xbf16>
    %69 = vector.shape_cast %68 : vector<1x32x32xbf16> to vector<32x32xbf16>
    %70 = vector.shape_cast %67 : vector<2x16x32xf32> to vector<32x32xf32>
    %71 = arith.truncf %70 : vector<32x32xf32> to vector<32x32xbf16>
    %cst_40 = arith.constant dense<0.000000e+00> : vector<32x32xf32>
    %72 = tpu.matmul %71, %69, %cst_40 {dimension_numbers = #tpu.dot_dimension_numbers<[1], [0], [0], [1], [0, 0, 1, 1], [], []>} : vector<32x32xbf16>, vector<32x32xbf16>, vector<32x32xf32> -> vector<32x32xf32>
    %73 = vector.shape_cast %72 : vector<32x32xf32> to vector<2x16x32xf32>
    %74 = arith.truncf %73 : vector<2x16x32xf32> to vector<2x16x32xbf16>
    %cst_41 = arith.constant dense<0.000000e+00> : vector<2x16x32xf32>
    %75 = tpu.matmul %9, %74, %cst_41 {dimension_numbers = #tpu.dot_dimension_numbers<[2], [1], [1], [2], [0, 0, 0, 1, 1, 2], [0], [0]>} : vector<2x16x16xbf16>, vector<2x16x32xbf16>, vector<2x16x32xf32> -> vector<2x16x32xf32>
    %c3_42 = arith.constant 3 : index
    %c0_43 = arith.constant 0 : index
    %c0_44 = arith.constant 0 : index
    %76 = vector.load %arg5[%c3_42, %c0_43, %c0_44] : memref<4x1x32xf32, #tpu.memory_space<vmem>>, vector<1x1x32xf32>
    %77 = vector.shape_cast %76 : vector<1x1x32xf32> to vector<1x32xf32>
    %78 = vector.shape_cast %77 : vector<1x32xf32> to vector<1x1x32xf32>
    %79 = vector.broadcast %16 : vector<2x16x1xf32> to vector<2x16x32xf32>
    %80 = arith.mulf %75, %79 : vector<2x16x32xf32>
    %81 = vector.broadcast %78 : vector<1x1x32xf32> to vector<2x16x32xf32>
    %82 = arith.addf %80, %81 : vector<2x16x32xf32>
    %cst_45 = arith.constant 0.000000e+00 : f32
    %83 = vector.broadcast %cst_45 : f32 to vector<2x16x32xf32>
    %84 = arith.maximumf %82, %83 : vector<2x16x32xf32>
    %cst_46 = arith.constant dense<0.000000e+00> : vector<2x32xf32>
    %85 = vector.multi_reduction <add>, %84, %cst_46 [1] : vector<2x16x32xf32> to vector<2x32xf32>
    %86 = vector.shape_cast %85 : vector<2x32xf32> to vector<2x1x32xf32>
    %87 = vector.broadcast %86 : vector<2x1x32xf32> to vector<2x16x32xf32>
    %88 = arith.mulf %87, %0 : vector<2x16x32xf32>
    %cst_47 = arith.constant dense<0.000000e+00> : vector<2x16xf32>
    %89 = vector.multi_reduction <add>, %88, %cst_47 [2] : vector<2x16x32xf32> to vector<2x16xf32>
    %cst_48 = arith.constant dense<0xFF800000> : vector<2xf32>
    %90 = vector.multi_reduction <maximumf>, %89, %cst_48 [1] : vector<2x16xf32> to vector<2xf32>
    %91 = vector.shape_cast %90 : vector<2xf32> to vector<2x1xf32>
    %92 = vector.broadcast %91 : vector<2x1xf32> to vector<2x16xf32>
    %93 = arith.subf %89, %92 : vector<2x16xf32>
    %94 = math.exp %93 : vector<2x16xf32>
    %cst_49 = arith.constant dense<0.000000e+00> : vector<2xf32>
    %95 = vector.multi_reduction <add>, %94, %cst_49 [1] : vector<2x16xf32> to vector<2xf32>
    %96 = vector.shape_cast %95 : vector<2xf32> to vector<2x1xf32>
    %97 = tpu.reciprocal %96 {approx = true} : vector<2x1xf32> -> vector<2x1xf32>
    %98 = vector.broadcast %97 : vector<2x1xf32> to vector<2x16xf32>
    %99 = arith.mulf %94, %98 : vector<2x16xf32>
    %100 = vector.shape_cast %99 : vector<2x16xf32> to vector<2x16x1xf32>
    %101 = vector.broadcast %100 : vector<2x16x1xf32> to vector<2x16x32xf32>
    %102 = arith.mulf %101, %0 : vector<2x16x32xf32>
    %cst_50 = arith.constant dense<0.000000e+00> : vector<2x32xf32>
    %103 = vector.multi_reduction <add>, %102, %cst_50 [1] : vector<2x16x32xf32> to vector<2x32xf32>
    %104 = arith.truncf %103 : vector<2x32xf32> to vector<2x32xbf16>
    %c0_51 = arith.constant 0 : index
    %c0_52 = arith.constant 0 : index
    %105 = vector.load %arg6[%c0_51, %c0_52] : memref<32x128xbf16, #tpu.memory_space<vmem>>, vector<32x128xbf16>
    %cst_53 = arith.constant dense<0.000000e+00> : vector<2x128xf32>
    %106 = tpu.matmul %104, %105, %cst_53 {dimension_numbers = #tpu.dot_dimension_numbers<[1], [0], [0], [1], [0, 0, 1, 1], [], []>} : vector<2x32xbf16>, vector<32x128xbf16>, vector<2x128xf32> -> vector<2x128xf32>
    %c0_54 = arith.constant 0 : index
    %c0_55 = arith.constant 0 : index
    %107 = vector.load %arg7[%c0_54, %c0_55] : memref<1x128xf32, #tpu.memory_space<vmem>>, vector<1x128xf32>
    %108 = vector.broadcast %107 : vector<1x128xf32> to vector<2x128xf32>
    %109 = arith.addf %106, %108 : vector<2x128xf32>
    %c0_56 = arith.constant 0 : index
    %c0_57 = arith.constant 0 : index
    %110 = vector.load %arg8[%c0_56, %c0_57] : memref<2x128xf32, #tpu.memory_space<vmem>>, vector<2x128xf32>
    tpu.vector_store %arg8[%c0_56, %c0_57], %109 {strides = array<i32>} : memref<2x128xf32, #tpu.memory_space<vmem>>, vector<2x128xf32>,
    return
  }
  func.func @transform_0(%arg0: i32) -> (i32, i32, i32) {
    %c0_i32 = arith.constant 0 : i32
    %c0_i32_0 = arith.constant 0 : i32
    %c0_i32_1 = arith.constant 0 : i32
    return %arg0, %c0_i32, %c0_i32_0 : i32, i32, i32
  }
  func.func @transform_1(%arg0: i32) -> (i32, i32, i32) {
    %c0_i32 = arith.constant 0 : i32
    %c0_i32_0 = arith.constant 0 : i32
    %c0_i32_1 = arith.constant 0 : i32
    return %arg0, %c0_i32, %c0_i32_0 : i32, i32, i32
  }
  func.func @transform_2(%arg0: i32) -> (i32, i32, i32) {
    %c0_i32 = arith.constant 0 : i32
    %c0_i32_0 = arith.constant 0 : i32
    %c0_i32_1 = arith.constant 0 : i32
    return %arg0, %c0_i32, %c0_i32_0 : i32, i32, i32
  }
  func.func @transform_3(%arg0: i32) -> (i32, i32, i32) {
    %c0_i32 = arith.constant 0 : i32
    %c0_i32_0 = arith.constant 0 : i32
    %c0_i32_1 = arith.constant 0 : i32
    %c0_i32_2 = arith.constant 0 : i32
    return %c0_i32, %c0_i32_0, %c0_i32_1 : i32, i32, i32
  }
  func.func @transform_4(%arg0: i32) -> (i32, i32, i32) {
    %c0_i32 = arith.constant 0 : i32
    %c0_i32_0 = arith.constant 0 : i32
    %c0_i32_1 = arith.constant 0 : i32
    %c0_i32_2 = arith.constant 0 : i32
    return %c0_i32, %c0_i32_0, %c0_i32_1 : i32, i32, i32
  }
  func.func @transform_5(%arg0: i32) -> (i32, i32) {
    %c0_i32 = arith.constant 0 : i32
    %c0_i32_0 = arith.constant 0 : i32
    %c0_i32_1 = arith.constant 0 : i32
    return %c0_i32, %c0_i32_0 : i32, i32
  }
  func.func @transform_6(%arg0: i32) -> (i32, i32) {
    %c0_i32 = arith.constant 0 : i32
    %c0_i32_0 = arith.constant 0 : i32
    %c0_i32_1 = arith.constant 0 : i32
    return %c0_i32, %c0_i32_0 : i32, i32
  }
  func.func @transform_7(%arg0: i32) -> (i32, i32) {
    %c0_i32 = arith.constant 0 : i32
    %c0_i32_0 = arith.constant 0 : i32
    return %arg0, %c0_i32 : i32, i32
  }
}

</mosaic_0001>

<bundles_post_ra>
// kernel: tpu_custom_call.1
= control target key start
LH: loop header
LB: loop body
LE: loop exit
PB: predicated region body
PF: predicated region fallthrough
CT: control target
= control target key end

     0   :  { %12 = vsyncpa [#allocation3], 0  ;;  %s1479_s0 = inlined_call_operand.hbm [shape: f32[2,16,32], index: 0, kind: input, shape index: {}]   ;;  %s1480_s1 = inlined_call_operand.hbm [shape: bf16[2,16,16], index: 1, kind: input, shape index: {}]   ;;  %s1481_s2 = inlined_call_operand.hbm [shape: bf16[2,16,16], index: 2, kind: input, shape index: {}]   ;;  %s1482_s3 = inlined_call_operand.hbm [shape: bf16[4,32,32], index: 3, kind: input, shape index: {}]   ;;  %s1483_s4 = inlined_call_operand.hbm [shape: f32[4,1,32], index: 4, kind: input, shape index: {}]   ;;  %s1484_s5 = inlined_call_operand.hbm [shape: bf16[32,128], index: 5, kind: input, shape index: {}]   ;;  %s1485_s6 = inlined_call_operand.vmem [shape: f32[1,128], index: 6, kind: input, shape index: {}]   ;;  %s1486_s7 = inlined_call_operand.hbm [shape: f32[2,128], index: 7, kind: output, shape index: {}]  }
   0x1   :  { %13 = vsyncpa [#allocation6], 0 }
   0x2   :  { %14 = vsyncpa [#allocation9], 0 }
   0x3   :  { %15 = vsyncpa [#allocation12], 0  ;;  %s34_s26 = sshll.u32 %s1480_s1, 4  ;;  %s35_s26 = int_to_ptr.hbm [resolvable:$true] %s34_s26 }
   0x4   :  { %16 = vsyncpa [#allocation4], 0  ;;  %s1275_s27 = smov [#allocation5]   ;;  %s60_s8 = sshll.u32 %s1482_s3, 4  ;;  %s61_s8 = int_to_ptr.hbm [resolvable:$true] %s60_s8 }
   0x5   :  { %s36_s28 = sshll.u32 %s1275_s27, 4  ;;  %s1276_s9 = smov 64   ;;  %s37_s28 = int_to_ptr.vmem [resolvable:$true] %s36_s28 }
   0x6   :  { %s1277_s10 = smov 4   ;;  %s1278_s11 = smov [#allocation8]  }
   0x7   :  { %42 = dma.hbm_to_vmem [thread:$0]  %s35_s26, 256, %s37_s28, [#allocation6], %s1276_s9, %s1276_s9, %s1277_s10  }
   0x8   :  { %s62_s12 = sshll.u32 %s1278_s11, 4  ;;  %s21_s14 = sshll.u32 %s1479_s0, 4  ;;  %s63_s12 = int_to_ptr.vmem [resolvable:$true] %s62_s12  ;;  %s22_s14 = int_to_ptr.hbm [resolvable:$true] %s21_s14 }
   0x9   :  { %68 = dma.hbm_to_vmem [thread:$0]  %s61_s8, 1024, %s63_s12, [#allocation9], %s1276_s9, %s1276_s9, %s1277_s10  }
   0xa   :  { %s1279_s3 = smov [#allocation2]   ;;  %s47_s18 = sshll.u32 %s1481_s2, 4  ;;  %s48_s18 = int_to_ptr.hbm [resolvable:$true] %s47_s18 }
   0xb   :  { %s23_s15 = sshll.u32 %s1279_s3, 4  ;;  %s1280_s19 = smov 128   ;;  %s24_s15 = int_to_ptr.vmem [resolvable:$true] %s23_s15 }
   0xc   :  { %s1281_s20 = smov 8   ;;  %s1282_s21 = smov [#allocation7]  }
   0xd   :  { %29 = dma.hbm_to_vmem [thread:$0]  %s22_s14, 512, %s24_s15, [#allocation3], %s1280_s19, %s1280_s19, %s1281_s20  }
   0xe   :  { %s49_s22 = sshll.u32 %s1282_s21, 4  ;;  %s73_s24 = sshll.u32 %s1483_s4, 4  ;;  %s50_s22 = int_to_ptr.vmem [resolvable:$true] %s49_s22  ;;  %s74_s24 = int_to_ptr.hbm [resolvable:$true] %s73_s24 }
   0xf   :  { %55 = dma.hbm_to_vmem [thread:$0]  %s48_s18, 256, %s50_s22, [#allocation6], %s1276_s9, %s1276_s9, %s1277_s10  }
  0x10   :  { %s1283_s25 = smov [#allocation10]   ;;  %s86_s28 = sshll.u32 %s1484_s5, 4  ;;  %s87_s28 = int_to_ptr.hbm [resolvable:$true] %s86_s28 }
  0x11   :  { %s75_s26 = sshll.u32 %s1283_s25, 4  ;;  %s1284_s29 = smov 16   ;;  %s76_s26 = int_to_ptr.vmem [resolvable:$true] %s75_s26 }
  0x12   :  { %s1285_s30 = smov 1   ;;  %s1286_s8 = smov [#allocation11]  }
  0x13   :  { %81 = dma.hbm_to_vmem [thread:$0]  %s74_s24, 64, %s76_s26, [#allocation9], %s1284_s29, %s1284_s29, %s1285_s30  }
  0x14   :  { %s88_s11 = sshll.u32 %s1286_s8, 4  ;;  %s89_s11 = int_to_ptr.vmem [resolvable:$true] %s88_s11 }
  0x15   :  { %94 = dma.hbm_to_vmem [thread:$0]  %s87_s28, 256, %s89_s11, [#allocation12], %s1276_s9, %s1276_s9, %s1277_s10  }
  0x16   :  { %1265 = dma.done.wait [#allocation3], 512  }
  0x17   :  { %1266 = vsyncadd [#allocation3], 4294966784 }
  0x18   :  { %1267 = dma.done.wait [#allocation6], 512  }
  0x19   :  { %1268 = vsyncadd [#allocation6], 4294966784 }
  0x1a   :  { %1269 = dma.done.wait [#allocation9], 1088  }
  0x1b   :  { %1270 = vsyncadd [#allocation9], 4294966208 }
  0x1c   :  { %1271 = dma.done.wait [#allocation12], 256  }
  0x1d   :  { %1272 = vsyncadd [#allocation12], 4294967040  ;;  %v1040_v0 = vld [vmem:[#allocation8 + $0x8] sm:$0xff]  ;;  %v1039_v1 = vld [vmem:[#allocation8] sm:$0xff]  ;;  %vm313_vm0 = vcmask 261120   ;;  %vm134_vm1 = vcmask 130048  }
  0x1e   :  { %v1359_v2 = vld [vmem:[#allocation2] sm:$0xff]  ;;  %v1361_v3 = vld [vmem:[#allocation2 + $0x8] sm:$0xff]  ;;  %326 = vmatpush.bf16.msra.mxu0 %v1040_v0  ;;  %v1366_v5 = vld [vmem:[#allocation2 + $0x10] sm:$0xff]  ;;  %s1288_s9 = smov [#allocation13]   ;;  %s949_s1 = sshll.u32 %s1486_s7, 4  ;;  %s950_s1 = int_to_ptr.hbm [resolvable:$true] %s949_s1 }
  0x1f   :  { %v299_v4 = vpack.c.bf16 %v1361_v3, %v1359_v2  ;;  %v1368_v6 = vld [vmem:[#allocation2 + $0x18] sm:$0xff]  ;;  %v126_v8 = vld [vmem:[#allocation5] sm:$0xff]   ;;  %v128_v13 = vld [vmem:[#allocation5 + $0x8] sm:$0xff]   ;;  %s947_s10 = sshll.u32 %s1288_s9, 4  ;;  %s948_s10 = int_to_ptr.vmem [resolvable:$true] %s947_s10 }
  0x20   :  { %v300_v7 = vpack.c.bf16 %v1368_v6, %v1366_v5  ;;  %v130_v9 = vunpack.c.l.bf16 %v126_v8  ;;  %v131_v11 = vunpack.c.h.bf16 %v126_v8  ;;  %v132_v14 = vunpack.c.l.bf16 %v128_v13  ;;  %v1377_v25 = vld [vmem:[#allocation5] sm:$0xff]  ;;  %v1381_v33 = vld [vmem:[#allocation5 + $0x8] sm:$0xff]  ;;  %v1042_v38 = vld [vmem:[#allocation8 + $0x18] sm:$0xff] }
  0x21   :  { %v133_v16 = vunpack.c.h.bf16 %v128_v13  ;;  %446 = vmatpush.bf16.msra.mxu3 %v1042_v38  ;;  %v1041_v39 = vld [vmem:[#allocation8 + $0x10] sm:$0xff] }
  0x22   :  { %327 = vmatpush.bf16.msra.mxu0 %v1039_v1  ;;  %v135_v10 = vsel %vm134_vm1, %v130_v9, 0.0  ;;  %v138_v12 = vsel %vm134_vm1, %v131_v11, 0.0  ;;  %v141_v15 = vsel %vm134_vm1, %v132_v14, 0.0  ;;  %v1066_v1 = vld [vmem:[#allocation10] ss:$0 sm:$0xff] }
  0x23   :  { %136 = vadd.xlane.f32.xlu0 %v135_v10  ;;  %142 = vadd.xlane.f32.xlu1 %v141_v15  ;;  %v144_v17 = vsel %vm134_vm1, %v133_v16, 0.0 }
  0x25   :  { %970 = vmatmul.msk.bf16.vlgmr.msra.gmra.mxu0 %vm313_vm0, %v299_v4  ;;  %447 = vmatpush.bf16.msra.mxu3 %v1041_v39 }
  0x2b   :  { %139 = vadd.xlane.f32.xlu0 %v138_v12  ;;  %145 = vadd.xlane.f32.xlu1 %v144_v17 }
  0x35   :  { %971 = vmatmul.msk.bf16.gmra.mxu0 %vm313_vm0, %v300_v7 }
  0x96   :  { %v137_v34 = vpop.xlane.xlu0 %136  ;;  %v143_v41 = vpop.xlane.xlu1 %142 }
  0x97   :  { %v147_v35 = vadd.f32 1.0, %v137_v34  ;;  %v149_v48 = vadd.f32 1.0, %v143_v41 }
  0x99   :  { %1071 = vrcp.f32 %v147_v35  ;;  %vm156_vm2 = vweird.f32 %v147_v35  ;;  %v162_v50 = vand.u32 2147483648, %v147_v35  ;;  %v160_v52 = vand.u32 2147483647, %v147_v35 }
  0x9a   :  { %vm186_vm10 = vweird.f32 %v149_v48 }
  0x9b   :  { %v163_v55 = vor.u32 1.1754944e-38, %v162_v50  ;;  %vm161_vm7 = vcmp.eq.f32.partialorder %v160_v52, 8.507059e+37  ;;  %v214_v50 = vld [vmem:[#allocation7 + $0x8] sm:$0xff]  }
  0x9c   :  { %v217_v52 = vunpack.c.l.bf16 %v214_v50 }
  0x9e   :  { %v140_v36 = vpop.xlane.xlu0 %139  ;;  %v146_v49 = vpop.xlane.xlu1 %145 }
  0x9f   :  { %v148_v37 = vadd.f32 1.0, %v140_v36  ;;  %v1072_v40 = vpop.eup %1071  ;;  %v150_v54 = vadd.f32 1.0, %v146_v49 }
  0xa0   :  { %v152_v42 = vmul.f32 %v1072_v40, %v147_v35  ;;  %vm157_vm3 = vweird.f32 %v1072_v40 }
  0xa1   :  { %1073 = vrcp.f32 %v148_v37  ;;  %vm158_vm4 = vmor %vm156_vm2, %vm157_vm3  ;;  %vm171_vm5 = vweird.f32 %v148_v37  ;;  %v177_v57 = vand.u32 2147483648, %v148_v37  ;;  %v175_v60 = vand.u32 2147483647, %v148_v37 }
  0xa2   :  { %v329_v18 = vpop.f32.mrf.mxu0  ;;  %v153_v44 = vsub.f32 1.0, %v152_v42  ;;  %1075 = vrcp.f32 %v149_v48  ;;  %vm201_vm13 = vweird.f32 %v150_v54 }
  0xa3   :  { %v339_v19 = vpack.c.bf16 %v329_v18, %v329_v18  ;;  %1077 = vrcp.f32 %v150_v54  ;;  %v178_v63 = vor.u32 1.1754944e-38, %v177_v57  ;;  %vm176_vm9 = vcmp.eq.f32.partialorder %v175_v60, 8.507059e+37 }
  0xa4   :  { %v154_v46 = vmul.f32 %v1072_v40, %v153_v44 }
  0xa5   :  { %v350_v22 = vunpack.c.l.b16 %v339_v19 }
  0xa6   :  { %v155_v51 = vadd.f32 %v1072_v40, %v154_v46 }
  0xa7   :  { %v1074_v43 = vpop.eup %1073 }
  0xa8   :  { %v167_v45 = vmul.f32 %v1074_v43, %v148_v37  ;;  %vm172_vm6 = vweird.f32 %v1074_v43  ;;  %v159_v58 = vsel %vm158_vm4, %v1072_v40, %v155_v51  ;;  %v1076_v61 = vpop.eup %1075  ;;  %v218_v51 = vunpack.c.h.bf16 %v214_v50 }
  0xa9   :  { %vm173_vm8 = vmor %vm171_vm5, %vm172_vm6  ;;  %v1385_v62 = vsel %vm161_vm7, %v163_v55, %v159_v58  ;;  %v182_v7 = vmul.f32 %v1076_v61, %v149_v48  ;;  %v1078_v8 = vpop.eup %1077  ;;  %vm187_vm11 = vweird.f32 %v1076_v61 }
  0xaa   :  { %v331_v20 = vpop.f32.mrf.mxu0  ;;  %v168_v47 = vsub.f32 1.0, %v167_v45  ;;  %v197_v15 = vmul.f32 %v1078_v8, %v150_v54  ;;  %vm188_vm12 = vmor %vm186_vm10, %vm187_vm11  ;;  %vm202_vm14 = vweird.f32 %v1078_v8  ;;  %v211_v45 = vld [vmem:[#allocation7] sm:$0xff]  }
  0xab   :  { %v340_v21 = vpack.c.bf16 %v331_v20, %v331_v20  ;;  %v183_v14 = vsub.f32 1.0, %v182_v7  ;;  %vm203_vm2 = vmor %vm201_vm13, %vm202_vm14  ;;  %v215_v46 = vunpack.c.l.bf16 %v211_v45 }
  0xac   :  { %v169_v53 = vmul.f32 %v1074_v43, %v168_v47  ;;  %v198_v20 = vsub.f32 1.0, %v197_v15 }
  0xad   :  { %v351_v23 = vunpack.c.l.b16 %v340_v21  ;;  %v184_v19 = vmul.f32 %v1076_v61, %v183_v14  ;;  %v192_v21 = vand.u32 2147483648, %v149_v48  ;;  %v219_v47 = vsel %vm134_vm1, %v215_v46, 0.0 }
  0xae   :  { %v170_v59 = vadd.f32 %v1074_v43, %v169_v53  ;;  %220 = vadd.xlane.f32.xlu2 %v219_v47  ;;  %v228_v53 = vsel %vm134_vm1, %v218_v51, 0.0  ;;  %v1067_v47 = vld [vmem:[#allocation10 + $0x1] ss:$0 sm:$0xff] }
  0xaf   :  { %v352_v24 = vpack.c.b16 %v351_v23, %v350_v22  ;;  %v185_v22 = vadd.f32 %v1076_v61, %v184_v19  ;;  %v190_v23 = vand.u32 2147483647, %v149_v48  ;;  %v216_v48 = vunpack.c.h.bf16 %v211_v45  ;;  %229 = vadd.xlane.f32.xlu1 %v228_v53 }
  0xb0   :  { %v174_v4 = vsel %vm173_vm8, %v1074_v43, %v170_v59 }
  0xb1   :  { %364 = vmatpush.bf16.msra.mxu1 %v352_v24  ;;  %v1388_v9 = vsel %vm176_vm9, %v178_v63, %v174_v4  ;;  %v199_v24 = vmul.f32 %v1078_v8, %v198_v20  ;;  %vm191_vm15 = vcmp.eq.f32.partialorder %v190_v23, 8.507059e+37  ;;  %v222_v49 = vsel %vm134_vm1, %v216_v48, 0.0  ;;  %v1403_v63 = vld [vmem:[#allocation7] sm:$0xff] }
  0xb2   :  { %v334_v26 = vpop.f32.mrf.mxu0 }
  0xb3   :  { %v341_v27 = vpack.c.bf16 %v334_v26, %v334_v26  ;;  %v193_v26 = vor.u32 1.1754944e-38, %v192_v21 }
  0xb4   :  { %976 = vmatmul.msk.bf16.vlgmr.msra.gmra.mxu1 %vm134_vm1, %v1377_v25 }
  0xb5   :  { %v378_v30 = vunpack.c.l.b16 %v341_v27 }
  0xb6   :  { %223 = vadd.xlane.f32.xlu2 %v222_v49 }
  0xba   :  { %v336_v28 = vpop.f32.mrf.mxu0 }
  0xbb   :  { %v342_v29 = vpack.c.bf16 %v336_v28, %v336_v28  ;;  %v207_v28 = vand.u32 2147483648, %v150_v54 }
  0xbd   :  { %v379_v31 = vunpack.c.l.b16 %v342_v29  ;;  %v189_v29 = vsel %vm188_vm12, %v1076_v61, %v185_v22  ;;  %v208_v34 = vor.u32 1.1754944e-38, %v207_v28 }
  0xbf   :  { %v380_v32 = vpack.c.b16 %v379_v31, %v378_v30  ;;  %v200_v30 = vadd.f32 %v1078_v8, %v199_v24  ;;  %v205_v31 = vand.u32 2147483647, %v150_v54  ;;  %v225_v54 = vsel %vm134_vm1, %v217_v52, 0.0 }
  0xc0   :  { %226 = vadd.xlane.f32.xlu0 %v225_v54 }
  0xc1   :  { %392 = vmatpush.bf16.msra.mxu2 %v380_v32  ;;  %v1392_v32 = vsel %vm191_vm15, %v193_v26, %v189_v29  ;;  %v204_v36 = vsel %vm203_vm2, %v1078_v8, %v200_v30  ;;  %vm206_vm3 = vcmp.eq.f32.partialorder %v205_v31, 8.507059e+37 }
  0xc2   :  { %v1395_v37 = vsel %vm206_vm3, %v208_v34, %v204_v36 }
  0xc4   :  { %981 = vmatmul.msk.bf16.vlgmr.msra.gmra.mxu2 %vm134_vm1, %v1381_v33 }
 0x131   :  { %v366_v56 = vpop.f32.mrf.mxu1 }
 0x132   :  { %v400_v0 = vmul.f32 %v366_v56, %v1385_v62 }
 0x133   :  { %v227_v30 = vpop.xlane.xlu0 %226 }
 0x134   :  { %v407_v11 = vadd.f32 %v1066_v1, %v400_v0  ;;  %v233_v36 = vadd.f32 1.0, %v227_v30 }
 0x136   :  { %v411_v16 = vmax.f32 %v407_v11, 0.0  ;;  %vm270_vm12 = vweird.f32 %v233_v36 }
 0x139   :  { %v368_v10 = vpop.f32.mrf.mxu1 }
 0x13a   :  { %v401_v12 = vmul.f32 %v368_v10, %v1388_v9 }
 0x13c   :  { %v408_v13 = vadd.f32 %v1066_v1, %v401_v12  ;;  %v1407_v12 = vld [vmem:[#allocation7 + $0x8] sm:$0xff] }
 0x13e   :  { %v412_v17 = vmax.f32 %v408_v13, 0.0  ;;  %v221_v13 = vpop.xlane.xlu2 %220 }
 0x13f   :  { %v231_v14 = vadd.f32 1.0, %v221_v13 }
 0x140   :  { %v420_v18 = vpack.c.bf16 %v412_v17, %v411_v16  ;;  %v1044_v17 = vld [vmem:[#allocation8 + $0x28] sm:$0xff] }
 0x141   :  { %1079 = vrcp.f32 %v231_v14  ;;  %vm240_vm4 = vweird.f32 %v231_v14  ;;  %v244_v29 = vand.u32 2147483647, %v231_v14 }
 0x142   :  { %990 = vmatmul.msk.bf16.vlgmr.msra.gmra.mxu3 %vm313_vm0, %v420_v18  ;;  %v1043_v18 = vld [vmem:[#allocation8 + $0x20] sm:$0xff] }
 0x143   :  { %vm245_vm9 = vcmp.eq.f32.partialorder %v244_v29, 8.507059e+37 }
 0x146   :  { %v224_v15 = vpop.xlane.xlu2 %223 }
 0x147   :  { %v394_v27 = vpop.f32.mrf.mxu2  ;;  %v232_v16 = vadd.f32 1.0, %v224_v15  ;;  %v1080_v19 = vpop.eup %1079 }
 0x148   :  { %v402_v35 = vmul.f32 %v394_v27, %v1392_v32  ;;  %v236_v20 = vmul.f32 %v1080_v19, %v231_v14  ;;  %vm241_vm5 = vweird.f32 %v1080_v19  ;;  %v246_v27 = vand.u32 2147483648, %v231_v14 }
 0x149   :  { %1081 = vrcp.f32 %v232_v16  ;;  %vm242_vm6 = vmor %vm240_vm4, %vm241_vm5  ;;  %vm255_vm7 = vweird.f32 %v232_v16 }
 0x14a   :  { %v409_v39 = vadd.f32 %v1066_v1, %v402_v35  ;;  %v237_v22 = vsub.f32 1.0, %v236_v20  ;;  %v247_v34 = vor.u32 1.1754944e-38, %v246_v27  ;;  %1083 = vrcp.f32 %v233_v36 }
 0x14c   :  { %v413_v42 = vmax.f32 %v409_v39, 0.0  ;;  %v238_v24 = vmul.f32 %v1080_v19, %v237_v22 }
 0x14e   :  { %v239_v28 = vadd.f32 %v1080_v19, %v238_v24 }
 0x14f   :  { %v396_v38 = vpop.f32.mrf.mxu2  ;;  %v1082_v21 = vpop.eup %1081 }
 0x150   :  { %v403_v40 = vmul.f32 %v396_v38, %v1395_v37  ;;  %v251_v23 = vmul.f32 %v1082_v21, %v232_v16  ;;  %vm256_vm8 = vweird.f32 %v1082_v21  ;;  %v261_v38 = vand.u32 2147483648, %v232_v16  ;;  %v1084_v53 = vpop.eup %1083 }
 0x151   :  { %v243_v39 = vsel %vm242_vm6, %v1080_v19, %v239_v28  ;;  %vm257_vm10 = vmor %vm255_vm7, %vm256_vm8  ;;  %vm271_vm13 = vweird.f32 %v1084_v53  ;;  %vm794_vm6 = vcmask 1041409   ;;  %vm797_vm7 = vcmask 123904  }
 0x152   :  { %v410_v41 = vadd.f32 %v1066_v1, %v403_v40  ;;  %v252_v26 = vsub.f32 1.0, %v251_v23  ;;  %v230_v40 = vpop.xlane.xlu1 %229  ;;  %v262_v45 = vor.u32 1.1754944e-38, %v261_v38  ;;  %vm272_vm14 = vmor %vm270_vm12, %vm271_vm13 }
 0x154   :  { %v414_v43 = vmax.f32 %v410_v41, 0.0  ;;  %v253_v31 = vmul.f32 %v1082_v21, %v252_v26 }
 0x156   :  { %v421_v44 = vpack.c.bf16 %v414_v43, %v413_v42  ;;  %v254_v41 = vadd.f32 %v1082_v21, %v253_v31  ;;  %v259_v42 = vand.u32 2147483647, %v232_v16  ;;  %v1411_v43 = vsel %vm245_vm9, %v247_v34, %v243_v39 }
 0x158   :  { %991 = vmatmul.msk.bf16.gmra.mxu3 %vm313_vm0, %v421_v44  ;;  %v234_v44 = vadd.f32 1.0, %v230_v40  ;;  %v258_v48 = vsel %vm257_vm10, %v1082_v21, %v254_v41  ;;  %vm260_vm11 = vcmp.eq.f32.partialorder %v259_v42, 8.507059e+37 }
 0x159   :  { %v1414_v49 = vsel %vm260_vm11, %v262_v45, %v258_v48 }
 0x15a   :  { %1085 = vrcp.f32 %v234_v44  ;;  %vm285_vm15 = vweird.f32 %v234_v44  ;;  %v291_v14 = vand.u32 2147483648, %v234_v44 }
 0x15c   :  { %v292_v19 = vor.u32 1.1754944e-38, %v291_v14 }
 0x1c5   :  { %v449_v55 = vpop.f32.mrf.mxu3 }
 0x1c6   :  { %v459_v56 = vpack.c.bf16 %v449_v55, %v449_v55 }
 0x1c8   :  { %v470_v59 = vunpack.c.l.b16 %v459_v56 }
 0x1cd   :  { %v451_v57 = vpop.f32.mrf.mxu3 }
 0x1ce   :  { %v460_v58 = vpack.c.bf16 %v451_v57, %v451_v57  ;;  %v266_v57 = vmul.f32 %v1084_v53, %v233_v36 }
 0x1d0   :  { %v471_v60 = vunpack.c.l.b16 %v460_v58  ;;  %v1086_v58 = vpop.eup %1085 }
 0x1d1   :  { %vm286_vm2 = vweird.f32 %v1086_v58 }
 0x1d2   :  { %v472_v61 = vpack.c.b16 %v471_v60, %v470_v59  ;;  %v267_v60 = vsub.f32 1.0, %v266_v57  ;;  %vm287_vm4 = vmor %vm285_vm15, %vm286_vm2 }
 0x1d4   :  { %484 = vmatpush.bf16.msrb.mxu1 %v472_v61  ;;  %v281_v61 = vmul.f32 %v1086_v58, %v234_v44 }
 0x1d7   :  { %996 = vmatmul.msk.bf16.vlgmr.msrb.gmra.mxu1 %vm134_vm1, %v1403_v63 }
 0x1d8   :  { %567 = vmatpush.bf16.msra.mxu1 %v1044_v17  ;;  %v289_v17 = vand.u32 2147483647, %v234_v44 }
 0x1da   :  { %vm290_vm5 = vcmp.eq.f32.partialorder %v289_v17, 8.507059e+37 }
 0x1db   :  { %v454_v0 = vpop.f32.mrf.mxu3 }
 0x1dc   :  { %v461_v1 = vpack.c.bf16 %v454_v0, %v454_v0  ;;  %568 = vmatpush.bf16.msra.mxu1 %v1043_v18  ;;  %v268_v0 = vmul.f32 %v1084_v53, %v267_v60 }
 0x1de   :  { %v498_v8 = vunpack.c.l.b16 %v461_v1  ;;  %v282_v1 = vsub.f32 1.0, %v281_v61 }
 0x1e3   :  { %v456_v4 = vpop.f32.mrf.mxu3 }
 0x1e4   :  { %v462_v7 = vpack.c.bf16 %v456_v4, %v456_v4  ;;  %v276_v4 = vand.u32 2147483648, %v233_v36 }
 0x1e6   :  { %v499_v10 = vunpack.c.l.b16 %v462_v7  ;;  %v269_v7 = vadd.f32 %v1084_v53, %v268_v0 }
 0x1e8   :  { %v500_v11 = vpack.c.b16 %v499_v10, %v498_v8  ;;  %v274_v8 = vand.u32 2147483647, %v233_v36  ;;  %v283_v10 = vmul.f32 %v1086_v58, %v282_v1  ;;  %v273_v15 = vsel %vm272_vm14, %v1084_v53, %v269_v7 }
 0x1ea   :  { %512 = vmatpush.bf16.msrb.mxu2 %v500_v11  ;;  %v277_v11 = vor.u32 1.1754944e-38, %v276_v4  ;;  %vm275_vm3 = vcmp.eq.f32.partialorder %v274_v8, 8.507059e+37  ;;  %v284_v16 = vadd.f32 %v1086_v58, %v283_v10 }
 0x1ec   :  { %v1418_v18 = vsel %vm275_vm3, %v277_v11, %v273_v15  ;;  %v288_v21 = vsel %vm287_vm4, %v1086_v58, %v284_v16 }
 0x1ed   :  { %1001 = vmatmul.msk.bf16.vlgmr.msrb.gmra.mxu2 %vm134_vm1, %v1407_v12  ;;  %v1421_v22 = vsel %vm290_vm5, %v292_v19, %v288_v21 }
 0x254   :  { %v486_v35 = vpop.f32.mrf.mxu1 }
 0x255   :  { %v521_v46 = vmul.f32 %v486_v35, %v1411_v43 }
 0x257   :  { %v528_v51 = vadd.f32 %v1067_v47, %v521_v46 }
 0x259   :  { %v532_v55 = vmax.f32 %v528_v51, 0.0  ;;  %v1045_v51 = vld [vmem:[#allocation8 + $0x30] sm:$0xff] }
 0x25c   :  { %v488_v50 = vpop.f32.mrf.mxu1 }
 0x25d   :  { %v522_v52 = vmul.f32 %v488_v50, %v1414_v49  ;;  %v1046_v50 = vld [vmem:[#allocation8 + $0x38] sm:$0xff] }
 0x25e   :  { %672 = vmatpush.bf16.msrb.mxu3 %v1046_v50 }
 0x25f   :  { %v529_v54 = vadd.f32 %v1067_v47, %v522_v52 }
 0x261   :  { %v533_v56 = vmax.f32 %v529_v54, 0.0  ;;  %v1068_v54 = vld [vmem:[#allocation10 + $0x2] ss:$0 sm:$0xff] }
 0x262   :  { %673 = vmatpush.bf16.msrb.mxu3 %v1045_v51 }
 0x263   :  { %v541_v59 = vpack.c.bf16 %v533_v56, %v532_v55 }
 0x265   :  { %1010 = vmatmul.msk.bf16.vlgmr.msra.gmra.mxu1 %vm313_vm0, %v541_v59 }
 0x270   :  { %v514_v13 = vpop.f32.mrf.mxu2 }
 0x271   :  { %v523_v20 = vmul.f32 %v514_v13, %v1418_v18 }
 0x273   :  { %v530_v24 = vadd.f32 %v1067_v47, %v523_v20 }
 0x275   :  { %v534_v28 = vmax.f32 %v530_v24, 0.0 }
 0x278   :  { %v516_v23 = vpop.f32.mrf.mxu2 }
 0x279   :  { %v524_v26 = vmul.f32 %v516_v23, %v1421_v22 }
 0x27b   :  { %v531_v27 = vadd.f32 %v1067_v47, %v524_v26 }
 0x27d   :  { %v535_v29 = vmax.f32 %v531_v27, 0.0 }
 0x27f   :  { %v542_v30 = vpack.c.bf16 %v535_v29, %v534_v28  ;;  %v1069_v28 = vld [vmem:[#allocation10 + $0x3] ss:$0 sm:$0xff] }
 0x281   :  { %1011 = vmatmul.msk.bf16.gmra.mxu1 %vm313_vm0, %v542_v30 }
 0x2e2   :  { %v570_v31 = vpop.f32.mrf.mxu1 }
 0x2e3   :  { %v580_v34 = vpack.c.bf16 %v570_v31, %v570_v31 }
 0x2e5   :  { %v586_v38 = vunpack.c.l.b16 %v580_v34 }
 0x2ea   :  { %v572_v35 = vpop.f32.mrf.mxu1 }
 0x2eb   :  { %v581_v36 = vpack.c.bf16 %v572_v35, %v572_v35 }
 0x2ed   :  { %v587_v39 = vunpack.c.l.b16 %v581_v36 }
 0x2ef   :  { %v588_v40 = vpack.c.b16 %v587_v39, %v586_v38 }
 0x2f1   :  { %597 = vmatpush.bf16.msra.mxu2 %v588_v40 }
 0x2f4   :  { %1012 = vmatmul.msk.bf16.vlgmr.msra.gmra.mxu2 %vm134_vm1, %v1377_v25 }
 0x2fe   :  { %v575_v41 = vpop.f32.mrf.mxu1 }
 0x2ff   :  { %v582_v42 = vpack.c.bf16 %v575_v41, %v575_v41 }
 0x301   :  { %v606_v46 = vunpack.c.l.b16 %v582_v42 }
 0x306   :  { %v577_v44 = vpop.f32.mrf.mxu1 }
 0x307   :  { %v583_v45 = vpack.c.bf16 %v577_v44, %v577_v44 }
 0x309   :  { %v607_v47 = vunpack.c.l.b16 %v583_v45 }
 0x30b   :  { %v608_v48 = vpack.c.b16 %v607_v47, %v606_v46 }
 0x30d   :  { %617 = vmatpush.bf16.msrb.mxu0 %v608_v48 }
 0x310   :  { %1013 = vmatmul.msk.bf16.vlgmr.msrb.gmra.mxu0 %vm134_vm1, %v1381_v33 }
 0x377   :  { %v599_v52 = vpop.f32.mrf.mxu2 }
 0x378   :  { %v626_v53 = vmul.f32 %v599_v52, %v1385_v62 }
 0x37a   :  { %v633_v55 = vadd.f32 %v1068_v54, %v626_v53 }
 0x37c   :  { %v637_v58 = vmax.f32 %v633_v55, 0.0 }
 0x37f   :  { %v601_v25 = vpop.f32.mrf.mxu2 }
 0x380   :  { %v627_v56 = vmul.f32 %v601_v25, %v1388_v9 }
 0x382   :  { %v634_v57 = vadd.f32 %v1068_v54, %v627_v56 }
 0x384   :  { %v638_v59 = vmax.f32 %v634_v57, 0.0 }
 0x386   :  { %v646_v60 = vpack.c.bf16 %v638_v59, %v637_v58 }
 0x388   :  { %1022 = vmatmul.msk.bf16.vlgmr.msrb.gmra.mxu3 %vm313_vm0, %v646_v60 }
 0x38d   :  { %v619_v61 = vpop.f32.mrf.mxu0 }
 0x38e   :  { %v628_v33 = vmul.f32 %v619_v61, %v1392_v32 }
 0x390   :  { %v635_v1 = vadd.f32 %v1068_v54, %v628_v33 }
 0x392   :  { %v639_v62 = vmax.f32 %v635_v1, 0.0 }
 0x395   :  { %v621_v0 = vpop.f32.mrf.mxu0 }
 0x396   :  { %v629_v4 = vmul.f32 %v621_v0, %v1395_v37 }
 0x398   :  { %v636_v7 = vadd.f32 %v1068_v54, %v629_v4 }
 0x39a   :  { %v640_v8 = vmax.f32 %v636_v7, 0.0 }
 0x39c   :  { %v647_v10 = vpack.c.bf16 %v640_v8, %v639_v62  ;;  %v784_v62 = vlaneseq }
 0x39e   :  { %1023 = vmatmul.msk.bf16.gmra.mxu3 %vm313_vm0, %v647_v10  ;;  %v785_v8 = vand.u32 127, %v784_v62 }
 0x40b   :  { %v675_v9 = vpop.f32.mrf.mxu3 }
 0x40c   :  { %v685_v11 = vpack.c.bf16 %v675_v9, %v675_v9  ;;  %v787_v9 = vadd.s32 4294967288, %v785_v8 }
 0x40e   :  { %v691_v15 = vunpack.c.l.b16 %v685_v11 }
 0x413   :  { %v677_v13 = vpop.f32.mrf.mxu3 }
 0x414   :  { %v686_v14 = vpack.c.bf16 %v677_v13, %v677_v13 }
 0x416   :  { %v692_v16 = vunpack.c.l.b16 %v686_v14 }
 0x418   :  { %v693_v17 = vpack.c.b16 %v692_v16, %v691_v15 }
 0x41a   :  { %702 = vmatpush.bf16.msrb.mxu2 %v693_v17 }
 0x41d   :  { %1024 = vmatmul.msk.bf16.vlgmr.msrb.gmra.mxu2 %vm134_vm1, %v1403_v63 }
 0x421   :  { %v680_v32 = vpop.f32.mrf.mxu3 }
 0x422   :  { %v687_v19 = vpack.c.bf16 %v680_v32, %v680_v32 }
 0x424   :  { %v711_v21 = vunpack.c.l.b16 %v687_v19 }
 0x429   :  { %v682_v37 = vpop.f32.mrf.mxu3 }
 0x42a   :  { %v688_v20 = vpack.c.bf16 %v682_v37, %v682_v37 }
 0x42c   :  { %v712_v23 = vunpack.c.l.b16 %v688_v20 }
 0x42e   :  { %v713_v24 = vpack.c.b16 %v712_v23, %v711_v21  ;;  %v1287_v23 = vmov 0  }
 0x42f   :  { %1065 = vset.pattern.permute.xlu0 %v1287_v23  ;;  %1064 = vset.pattern.permute.xlu2 %v1287_v23 }
 0x430   :  { %722 = vmatpush.bf16.msra.mxu0 %v713_v24  ;;  %1063 = vset.pattern.permute.xlu1 %v1287_v23 }
 0x433   :  { %1025 = vmatmul.msk.bf16.vlgmr.msra.gmra.mxu0 %vm134_vm1, %v1407_v12  ;;  %vm789_vm1 = vcmask 130112  }
 0x4a0   :  { %v704_v26 = vpop.f32.mrf.mxu2 }
 0x4a1   :  { %v731_v27 = vmul.f32 %v704_v26, %v1411_v43 }
 0x4a3   :  { %v738_v29 = vadd.f32 %v1069_v28, %v731_v27 }
 0x4a5   :  { %v742_v63 = vmax.f32 %v738_v29, 0.0 }
 0x4a7   :  { %v746_v36 = vsel %vm313_vm0, %v742_v63, 0.0 }
 0x4a8   :  { %v706_v30 = vpop.f32.mrf.mxu2 }
 0x4a9   :  { %v732_v31 = vmul.f32 %v706_v30, %v1414_v49 }
 0x4ab   :  { %v739_v34 = vadd.f32 %v1069_v28, %v732_v31 }
 0x4ad   :  { %v743_v35 = vmax.f32 %v739_v34, 0.0 }
 0x4af   :  { %v747_v38 = vsel %vm313_vm0, %v743_v35, 0.0 }
 0x4b0   :  { %v748_v39 = vadd.f32 %v747_v38, %v746_v36  ;;  %v724_v40 = vpop.f32.mrf.mxu0 }
 0x4b1   :  { %v733_v12 = vmul.f32 %v724_v40, %v1418_v18 }
 0x4b2   :  { %v749_v41 = vrot.slane %v748_v39, 4 }
 0x4b3   :  { %v740_v43 = vadd.f32 %v1069_v28, %v733_v12 }
 0x4b4   :  { %v750_v42 = vadd.f32 %v749_v41, %v748_v39 }
 0x4b5   :  { %v744_v48 = vmax.f32 %v740_v43, 0.0 }
 0x4b6   :  { %v751_v44 = vrot.slane %v750_v42, 2 }
 0x4b7   :  { %v755_v25 = vsel %vm313_vm0, %v744_v48, 0.0 }
 0x4b8   :  { %v726_v45 = vpop.f32.mrf.mxu0  ;;  %v752_v46 = vadd.f32 %v751_v44, %v750_v42 }
 0x4b9   :  { %v734_v47 = vmul.f32 %v726_v45, %v1421_v22 }
 0x4ba   :  { %v753_v49 = vrot.slane %v752_v46, 1 }
 0x4bb   :  { %v741_v50 = vadd.f32 %v1069_v28, %v734_v47 }
 0x4bc   :  { %v754_v51 = vadd.f32 %v753_v49, %v752_v46 }
 0x4bd   :  { %v745_v52 = vmax.f32 %v741_v50, 0.0 }
 0x4be   :  { %v765_v53 = vmul.f32 %v754_v51, %v1361_v3  ;;  %v764_v54 = vmul.f32 %v754_v51, %v1359_v2 }
 0x4bf   :  { %v756_v18 = vsel %vm313_vm0, %v745_v52, 0.0 }
 0x4c0   :  { %v757_v55 = vadd.f32 %v756_v18, %v755_v25  ;;  %v771_v56 = vsel %vm313_vm0, %v765_v53, 0.0  ;;  %v768_v57 = vsel %vm313_vm0, %v764_v54, 0.0 }
 0x4c1   :  { %772 = vadd.xlane.f32.xlu0 %v771_v56  ;;  %769 = vadd.xlane.f32.xlu2 %v768_v57 }
 0x4c2   :  { %v758_v22 = vrot.slane %v757_v55, 4 }
 0x4c4   :  { %v759_v58 = vadd.f32 %v758_v22, %v757_v55 }
 0x4c6   :  { %v760_v59 = vrot.slane %v759_v58, 2 }
 0x4c8   :  { %v761_v60 = vadd.f32 %v760_v59, %v759_v58 }
 0x4ca   :  { %v762_v61 = vrot.slane %v761_v60, 1 }
 0x4cc   :  { %v763_v33 = vadd.f32 %v762_v61, %v761_v60 }
 0x4ce   :  { %v767_v0 = vmul.f32 %v763_v33, %v1368_v6  ;;  %v766_v1 = vmul.f32 %v763_v33, %v1366_v5  ;;  %v1048_v33 = vld [vmem:[#allocation11 + $0x8] sm:$0xff] }
 0x4cf   :  { %934 = vmatpush.bf16.msrb.mxu1 %v1048_v33 }
 0x4d0   :  { %v777_v4 = vsel %vm313_vm0, %v767_v0, 0.0  ;;  %v774_v7 = vsel %vm313_vm0, %v766_v1, 0.0 }
 0x4d1   :  { %778 = vadd.xlane.f32.xlu2 %v777_v4  ;;  %775 = vadd.xlane.f32.xlu1 %v774_v7  ;;  %v1047_v7 = vld [vmem:[#allocation11] sm:$0xff] }
 0x4d3   :  { %935 = vmatpush.bf16.msrb.mxu1 %v1047_v7 }
 0x534   :  { %v770_v10 = vpop.xlane.xlu2 %769  ;;  %v773_v11 = vpop.xlane.xlu0 %772 }
 0x535   :  { %v788_v13 = vperm.slane %v773_v11, %v787_v9  ;;  %v786_v14 = vperm.slane %v770_v10, %v785_v8 }
 0x537   :  { %v790_v19 = vsel %vm789_vm1, %v788_v13, %v786_v14 }
 0x544   :  { %v779_v15 = vpop.xlane.xlu2 %778  ;;  %v776_v16 = vpop.xlane.xlu1 %775 }
 0x545   :  { %v792_v17 = vperm.slane %v779_v15, %v787_v9  ;;  %v791_v32 = vperm.slane %v776_v16, %v785_v8 }
 0x547   :  { %v793_v37 = vsel %vm789_vm1, %v792_v17, %v791_v32 }
 0x548   :  { %v795_v20 = vsel %vm794_vm6, %v793_v37, %v790_v19 }
 0x549   :  { %v798_v21 = vsel %vm797_vm7, %v795_v20, -inf }
 0x54a   :  { %799 = vmax.xlane.f32.xlu0 %v798_v21 }
 0x5bd   :  { %v800_v24 = vpop.xlane.xlu0 %799 }
 0x5be   :  { %v802_v26 = vperm.slane %v800_v24, 0  ;;  %v803_v27 = vperm.slane %v800_v24, 1 }
 0x5c0   :  { %v806_v28 = vsub.f32 %v770_v10, %v802_v26  ;;  %v807_v29 = vsub.f32 %v773_v11, %v802_v26  ;;  %v808_v30 = vsub.f32 %v776_v16, %v803_v27  ;;  %v809_v35 = vsub.f32 %v779_v15, %v803_v27 }
 0x5c2   :  { %v810_v31 = vmul.f32 1.442695, %v806_v28  ;;  %v812_v63 = vmul.f32 1.442695, %v807_v29  ;;  %v814_v34 = vmul.f32 1.442695, %v808_v30 }
 0x5c3   :  { %v816_v36 = vmul.f32 1.442695, %v809_v35  ;;  %v1070_v30 = vld [vmem:[%s1485_s6] ss:$0 sm:$0xff] }
 0x5c4   :  { %1087 = vpow2.f32 %v810_v31 }
 0x5c5   :  { %1089 = vpow2.f32 %v812_v63 }
 0x5c6   :  { %1091 = vpow2.f32 %v814_v34 }
 0x5c7   :  { %1093 = vpow2.f32 %v816_v36 }
 0x5ca   :  { %v1088_v38 = vpop.eup %1087 }
 0x5cb   :  { %v1090_v39 = vpop.eup %1089  ;;  %823 = vperm.xlu1 %1063, %v1088_v38  }
 0x5cc   :  { %v1092_v40 = vpop.eup %1091  ;;  %826 = vperm.xlu2 %1064, %v1090_v39  }
 0x5cd   :  { %829 = vperm.xlu0 %1065, %v1092_v40   ;;  %v1094_v41 = vpop.eup %1093 }
 0x5d4   :  { %832 = vperm.xlu2 %1064, %v1094_v41  }
 0x626   :  { %v827_v12 = vpop.permute.xlu2 %826 }
 0x627   :  { %v835_v43 = vperm.slane %v827_v12, %v787_v9 }
 0x62e   :  { %v833_v42 = vpop.permute.xlu2 %832 }
 0x62f   :  { %v838_v47 = vperm.slane %v833_v42, %v787_v9 }
 0x63d   :  { %v824_v44 = vpop.permute.xlu1 %823 }
 0x63e   :  { %v834_v45 = vperm.slane %v824_v44, %v785_v8 }
 0x63f   :  { %v830_v46 = vpop.permute.xlu0 %829 }
 0x640   :  { %v837_v49 = vperm.slane %v830_v46, %v785_v8  ;;  %v836_v48 = vsel %vm789_vm1, %v835_v43, %v834_v45 }
 0x642   :  { %v839_v50 = vsel %vm789_vm1, %v838_v47, %v837_v49 }
 0x643   :  { %v840_v51 = vsel %vm794_vm6, %v839_v50, %v836_v48 }
 0x644   :  { %v842_v52 = vsel %vm797_vm7, %v840_v51, 0.0 }
 0x645   :  { %843 = vadd.xlane.f32.xlu1 %v842_v52 }
 0x6b8   :  { %v844_v53 = vpop.xlane.xlu1 %843 }
 0x6b9   :  { %1095 = vrcp.f32 %v844_v53 }
 0x6bf   :  { %v1096_v54 = vpop.eup %1095 }
 0x6c0   :  { %v848_v25 = vperm.slane %v1096_v54, 1  ;;  %v847_v18 = vperm.slane %v1096_v54, 0 }
 0x6c2   :  { %v853_v55 = vmul.f32 %v1092_v40, %v848_v25  ;;  %v851_v56 = vmul.f32 %v1088_v38, %v847_v18  ;;  %v852_v57 = vmul.f32 %v1090_v39, %v847_v18  ;;  %v854_v22 = vmul.f32 %v1094_v41, %v848_v25 }
 0x6c4   :  { %867 = vperm.xlu0 %1065, %v853_v55   ;;  %857 = vperm.xlu2 %1064, %v851_v56  }
 0x6cc   :  { %862 = vperm.xlu2 %1064, %v852_v57  }
 0x6d4   :  { %872 = vperm.xlu2 %1064, %v854_v22  }
 0x71e   :  { %v858_v58 = vpop.permute.xlu2 %857 }
 0x71f   :  { %v875_v59 = vmul.f32 %v858_v58, %v1359_v2 }
 0x721   :  { %v879_v0 = vsel %vm313_vm0, %v875_v59, 0.0 }
 0x726   :  { %v863_v60 = vpop.permute.xlu2 %862 }
 0x727   :  { %v876_v61 = vmul.f32 %v863_v60, %v1361_v3 }
 0x729   :  { %v880_v1 = vsel %vm313_vm0, %v876_v61, 0.0 }
 0x72a   :  { %v881_v4 = vadd.f32 %v880_v1, %v879_v0 }
 0x72c   :  { %v882_v62 = vrot.slane %v881_v4, 4 }
 0x72e   :  { %v883_v8 = vadd.f32 %v882_v62, %v881_v4  ;;  %v873_v10 = vpop.permute.xlu2 %872 }
 0x72f   :  { %v878_v9 = vmul.f32 %v873_v10, %v1368_v6 }
 0x730   :  { %v884_v11 = vrot.slane %v883_v8, 2 }
 0x731   :  { %v889_v3 = vsel %vm313_vm0, %v878_v9, 0.0 }
 0x732   :  { %v885_v15 = vadd.f32 %v884_v11, %v883_v8 }
 0x734   :  { %v886_v32 = vrot.slane %v885_v15, 1 }
 0x736   :  { %v868_v13 = vpop.permute.xlu0 %867  ;;  %v887_v20 = vadd.f32 %v886_v32, %v885_v15 }
 0x737   :  { %v877_v2 = vmul.f32 %v868_v13, %v1366_v5 }
 0x738   :  { %v897_v24 = vpack.c.bf16 %v887_v20, %v887_v20 }
 0x739   :  { %v888_v14 = vsel %vm313_vm0, %v877_v2, 0.0 }
 0x73a   :  { %v890_v16 = vadd.f32 %v889_v3, %v888_v14  ;;  %v909_v27 = vunpack.c.l.b16 %v897_v24 }
 0x73c   :  { %v891_v17 = vrot.slane %v890_v16, 4 }
 0x73e   :  { %v892_v19 = vadd.f32 %v891_v17, %v890_v16 }
 0x740   :  { %v893_v37 = vrot.slane %v892_v19, 2 }
 0x742   :  { %v894_v21 = vadd.f32 %v893_v37, %v892_v19 }
 0x744   :  { %v895_v23 = vrot.slane %v894_v21, 1 }
 0x746   :  { %v896_v26 = vadd.f32 %v895_v23, %v894_v21 }
 0x748   :  { %v898_v6 = vpack.c.bf16 %v896_v26, %v896_v26 }
 0x74a   :  { %v910_v28 = vunpack.c.l.b16 %v898_v6 }
 0x74c   :  { %v911_v5 = vsel %vm794_vm6, %v910_v28, %v909_v27 }
 0x74d   :  { %v912_v29 = vpack.c.b16 %v911_v5, %v911_v5 }
 0x74f   :  { %1034 = vmatmul.msk.bf16.vlgmr.msrb.gmra.mxu1 %vm313_vm0, %v912_v29 }
 0x7cc   :  { %v937_v31 = vpop.f32.mrf.mxu1 }
 0x7cd   :  { %v938_v63 = vadd.f32 %v1070_v30, %v937_v31 }
 0x7cf   :  { %941 = vst [vmem:[#allocation13] sm:$0x3] %v938_v63 }
 0x7d0   :  { %952 = dma.vmem_to_hbm [thread:$0]  %s948_s10, 32, %s950_s1, [#allocation4]  }
 0x7d4   :  { %v939_v34 = vpop.f32.mrf.mxu1 }
 0x7d5   :  { %1273 = dma.done.wait [#allocation4], 32  }
 0x7d6   :  { %1274 = vsyncadd [#allocation4], 4294967264 }
 0x7d7   :  { %957 = vsyncpa [#allocation3], 1 }
 0x7d8   :  { %958 = vsyncpa [#allocation6], 1 }
 0x7d9   :  { %959 = vsyncpa [#allocation9], 1 }
 0x7da   :  { %960 = vsyncpa [#allocation12], 1 }
 0x7db   :  { %961 = vsyncpa [#allocation4], 1 }

</bundles_post_ra>
